<compile_context>
chip_gen: v6e
topology: v6e:2x2x1
jax: 0.10.0
libtpu: 0.0.40
codegen_flags: <defaults>
</compile_context>

<pallas_src>
import jax
import jax.numpy as jnp
from jax.experimental import pallas as pl
from jax.experimental.pallas import tpu as pltpu

_LANE = 128   # lane width: last-dim alignment for every operand
_ROW = 16     # bf16 packs 16 rows per sublane group -> batch-tile granularity


def _classifier_kernel(x_ref, w1_ref, b1_ref, w2_ref, b2_ref, w3_ref, b3_ref,
                       o_ref):
    """Fused 3-layer MLP head on one batch tile.

    x arrives as f32 straight from HBM and is cast to bf16 in-register for the
    MXU; accumulation, bias-add and ReLU are in f32. BatchNorm is already
    folded into w1/b1 and w2/b2; Dropout is identity at inference.
    """
    x = x_ref[...].astype(jnp.bfloat16)

    # Layer 1: Linear + (folded) BatchNorm + ReLU
    h1 = jnp.dot(x, w1_ref[...], preferred_element_type=jnp.float32)
    h1 = jnp.maximum(h1 + b1_ref[...], 0.0).astype(jnp.bfloat16)

    # Layer 2: Linear + (folded) BatchNorm + ReLU
    h2 = jnp.dot(h1, w2_ref[...], preferred_element_type=jnp.float32)
    h2 = jnp.maximum(h2 + b2_ref[...], 0.0).astype(jnp.bfloat16)

    # Output layer: Linear; bf16 lane-dense padded store (sliced outside).
    out = jnp.dot(h2, w3_ref[...], preferred_element_type=jnp.float32)
    o_ref[...] = (out + b3_ref[...]).astype(o_ref.dtype)


def _round_up(n, m):
    return ((n + m - 1) // m) * m


def _vmem_limit_bytes():
    """v5e/v6e have 128 MiB physical VMEM per TC -> lift the scoped limit well
    above the 32 MiB default; v7x only has 64 MiB, so stay at <= 48 MiB."""
    try:
        kind = jax.devices()[0].device_kind.lower()
    except Exception:
        kind = ""
    if "v5" in kind or "v6" in kind:
        return 96 * 1024 * 1024
    return 48 * 1024 * 1024


def _choose_tile_b(B, tile_b):
    """Batch tile: multiple of 16, capped at tile_b, and (when the batch is big
    enough) at least 2 grid steps so the 'parallel' axis can span both v7x
    TensorCores, while minimizing padded-row waste (Bp - B)."""
    tile_b = max(_ROW, (tile_b // _ROW) * _ROW)
    bp_min = _round_up(B, _ROW)
    if bp_min >= 2 * _ROW:
        n_steps = max(2, pl.cdiv(bp_min, tile_b))
        tile = _round_up(pl.cdiv(bp_min, n_steps), _ROW)
    else:
        tile = bp_min
    return tile, _round_up(B, tile)


def classifier_forward(x, params, *, tile_b=1024):
    """Runs the fused classifier head as a batch-tiled Pallas kernel.

    Args:
      x: [B, input_dim] float32 activations.
      params: (w1, b1, w2, b2, w3, b3) folded f32 params, weights [in, out].
      tile_b: max rows per grid step (sized for VMEM; clamped/split as needed).
    """
    w1, b1, w2, b2, w3, b3 = params
    B, D = x.shape
    H, H2, C = w1.shape[1], w2.shape[1], w3.shape[1]

    # Lane-align every feature dimension (zero padding is exact: padded
    # inputs/weights/biases contribute 0, ReLU(0) = 0).
    Dp, Hp, H2p, Cp = (_round_up(d, _LANE) for d in (D, H, H2, C))
    TILE_B, Bp = _choose_tile_b(B, tile_b)

    # x stays f32 (cast to bf16 inside the kernel); pad only when required so
    # the aligned case streams the original array with no extra HBM pass.
    xp = x.astype(jnp.float32)
    if (Bp, Dp) != (B, D):
        xp = jnp.pad(xp, ((0, Bp - B), (0, Dp - D)))

    def pad2(a, rows, cols):
        return jnp.pad(a, ((0, rows - a.shape[0]), (0, cols - a.shape[1])))

    # Pad in f32, then cast matmul weights to bf16 (BN fold stays exact in f32).
    w1p = pad2(w1, Dp, Hp).astype(jnp.bfloat16)
    w2p = pad2(w2, Hp, H2p).astype(jnp.bfloat16)
    w3p = pad2(w3, H2p, Cp).astype(jnp.bfloat16)
    b1p = jnp.pad(b1, (0, Hp - H)).reshape(1, Hp).astype(jnp.float32)
    b2p = jnp.pad(b2, (0, H2p - H2)).reshape(1, H2p).astype(jnp.float32)
    b3p = jnp.pad(b3, (0, Cp - C)).reshape(1, Cp).astype(jnp.float32)

    flops = 2 * Bp * (Dp * Hp + Hp * H2p + H2p * Cp)
    bytes_accessed = (xp.size * 4                                   # f32 x
                      + (w1p.size + w2p.size + w3p.size) * 2        # bf16 weights
                      + (b1p.size + b2p.size + b3p.size) * 4        # f32 biases
                      + Bp * Cp * 2)                                # bf16 output

    def build_call(single_buffer_weights):
        def resident(shape):
            idx = lambda i: (0, 0)   # one block, VMEM-resident across the grid
            if single_buffer_weights:
                # Constant block across all grid steps -> no double-buffering.
                return pl.BlockSpec(shape, idx, pipeline_mode=pl.Buffered(1))
            return pl.BlockSpec(shape, idx)

        return pl.pallas_call(
            _classifier_kernel,
            out_shape=jax.ShapeDtypeStruct((Bp, Cp), jnp.bfloat16),
            grid_spec=pltpu.PrefetchScalarGridSpec(
                num_scalar_prefetch=0,
                grid=(Bp // TILE_B,),
                in_specs=[
                    pl.BlockSpec((TILE_B, Dp), lambda i: (i, 0)),  # streamed x
                    resident((Dp, Hp)),  resident((1, Hp)),        # w1, b1
                    resident((Hp, H2p)), resident((1, H2p)),       # w2, b2
                    resident((H2p, Cp)), resident((1, Cp)),        # w3, b3
                ],
                out_specs=pl.BlockSpec((TILE_B, Cp), lambda i: (i, 0)),
            ),
            compiler_params=pltpu.CompilerParams(
                dimension_semantics=("parallel",),     # batch tiles across TCs
                vmem_limit_bytes=_vmem_limit_bytes(),
            ),
            cost_estimate=pl.CostEstimate(
                flops=flops, transcendentals=0, bytes_accessed=bytes_accessed),
        )

    args = (xp, w1p, b1p, w2p, b2p, w3p, b3p)
    try:
        out_padded = build_call(True)(*args)
    except Exception:
        # Compatibility fallback for JAX versions without BlockSpec
        # pipeline_mode / pl.Buffered; semantics are identical.
        out_padded = build_call(False)(*args)

    return out_padded[:B, :C].astype(jnp.float32)


def classifier_forward_auto(x, params, *, tile_b=1024, min_pallas_rows=256):
    """Dispatcher: tiny problems are launch-overhead-bound in Pallas, so fall
    back to a plain XLA path below `min_pallas_rows` batch rows."""
    if x.shape[0] < min_pallas_rows:
        return reference_forward(x, params)
    return classifier_forward(x, params, tile_b=tile_b)


def _fold_bn(w, b, gamma, beta, running_mean, running_var, eps=1e-5):
    """Fold an eval-mode BatchNorm1d into the preceding Linear (exact, f32)."""
    scale = gamma / jnp.sqrt(running_var + eps)  # [out]
    w_f = w * scale[None, :]                     # [in, out]
    b_f = (b - running_mean) * scale + beta      # [out]
    return w_f, b_f


def make_params(key, input_dim, hidden_dim, num_classes):
    """Deterministic synthetic parameters (PyTorch-style uniform init), f32."""
    h2 = hidden_dim // 2
    keys = jax.random.split(key, 12)

    def linear(kw, kb, fan_in, fan_out):
        bound = 1.0 / jnp.sqrt(fan_in)
        w = jax.random.uniform(kw, (fan_in, fan_out), jnp.float32, -bound, bound)
        b = jax.random.uniform(kb, (fan_out,), jnp.float32, -bound, bound)
        return w, b

    def bn_stats(km, kv, dim):
        gamma = jnp.ones((dim,), jnp.float32)
        beta = jnp.zeros((dim,), jnp.float32)
        mean = 0.1 * jax.random.normal(km, (dim,), jnp.float32)
        var = 1.0 + 0.1 * jax.random.uniform(kv, (dim,), jnp.float32)
        return gamma, beta, mean, var

    w1, b1 = linear(keys[0], keys[1], input_dim, hidden_dim)
    w2, b2 = linear(keys[2], keys[3], hidden_dim, h2)
    w3, b3 = linear(keys[4], keys[5], h2, num_classes)

    w1, b1 = _fold_bn(w1, b1, *bn_stats(keys[6], keys[7], hidden_dim))
    w2, b2 = _fold_bn(w2, b2, *bn_stats(keys[8], keys[9], h2))

    return (w1, b1, w2, b2, w3, b3)


def reference_forward(x, params):
    """Plain-JAX f32 reference (same folded parameters)."""
    w1, b1, w2, b2, w3, b3 = params
    h1 = jnp.maximum(x @ w1 + b1[None, :], 0.0)
    h2 = jnp.maximum(h1 @ w2 + b2[None, :], 0.0)
    return h2 @ w3 + b3[None, :]


# TODO(synk): training-mode BatchNorm (batch statistics) and stochastic Dropout
# are not implemented; this kernel reproduces eval/inference semantics.

if __name__ == "__main__":
    B, INPUT_DIM, HIDDEN_DIM, NUM_CLASSES = 8, 32, 32, 8

    key = jax.random.PRNGKey(0)
    k_x, k_p = jax.random.split(key)
    x = jax.random.normal(k_x, (B, INPUT_DIM), jnp.float32)
    params = make_params(k_p, INPUT_DIM, HIDDEN_DIM, NUM_CLASSES)

    # Call the Pallas path directly to exercise the kernel (at these demo
    # shapes the auto-dispatcher would prefer plain XLA).
    out = classifier_forward(x, params)
    out = jax.block_until_ready(out)

    ref = reference_forward(x, params)
    assert out.shape == (B, NUM_CLASSES)
    # Tolerance loosened for bf16 matmul operands / bf16 output store
    # (f32 MXU accumulation).
    assert jnp.allclose(out, ref, atol=5e-2, rtol=5e-2), (
        float(jnp.max(jnp.abs(out - ref))))

    print("KERNEL_OK")
</pallas_src>

<mosaic_0001>
module attributes {stable_mosaic.version = 11 : i64} {
  func.func @_classifier_kernel(%arg0: i32, %arg1: memref<16x128xf32, #tpu.memory_space<vmem>>, %arg2: memref<128x128xbf16, #tpu.memory_space<vmem>>, %arg3: memref<1x128xf32, #tpu.memory_space<vmem>>, %arg4: memref<128x128xbf16, #tpu.memory_space<vmem>>, %arg5: memref<1x128xf32, #tpu.memory_space<vmem>>, %arg6: memref<128x128xbf16, #tpu.memory_space<vmem>>, %arg7: memref<1x128xf32, #tpu.memory_space<vmem>>, %arg8: memref<16x128xbf16, #tpu.memory_space<vmem>>) attributes {dimension_semantics = [#tpu.dimension_semantics<parallel>], iteration_bounds = array<i64: 1>, scalar_prefetch = 0 : i64, scratch_operands = 0 : i64, tpu.core_type = #tpu.core_type<tc>, window_params = [{transform_indices = @transform_0, window_bounds = array<i64: 16, 128>}, {pipeline_mode = #tpu.pipeline_mode<synchronous>, transform_indices = @transform_1, window_bounds = array<i64: 128, 128>}, {pipeline_mode = #tpu.pipeline_mode<synchronous>, transform_indices = @transform_2, window_bounds = array<i64: 1, 128>}, {pipeline_mode = #tpu.pipeline_mode<synchronous>, transform_indices = @transform_3, window_bounds = array<i64: 128, 128>}, {pipeline_mode = #tpu.pipeline_mode<synchronous>, transform_indices = @transform_4, window_bounds = array<i64: 1, 128>}, {pipeline_mode = #tpu.pipeline_mode<synchronous>, transform_indices = @transform_5, window_bounds = array<i64: 128, 128>}, {pipeline_mode = #tpu.pipeline_mode<synchronous>, transform_indices = @transform_6, window_bounds = array<i64: 1, 128>}, {transform_indices = @transform_7, window_bounds = array<i64: 16, 128>}]} {
    %c0 = arith.constant 0 : index
    %c0_0 = arith.constant 0 : index
    %0 = vector.load %arg1[%c0, %c0_0] : memref<16x128xf32, #tpu.memory_space<vmem>>, vector<16x128xf32>
    %1 = arith.truncf %0 : vector<16x128xf32> to vector<16x128xbf16>
    %c0_1 = arith.constant 0 : index
    %c0_2 = arith.constant 0 : index
    %2 = vector.load %arg2[%c0_1, %c0_2] : memref<128x128xbf16, #tpu.memory_space<vmem>>, vector<128x128xbf16>
    %cst = arith.constant dense<0.000000e+00> : vector<16x128xf32>
    %3 = tpu.matmul %1, %2, %cst {dimension_numbers = #tpu.dot_dimension_numbers<[1], [0], [0], [1], [0, 0, 1, 1], [], []>} : vector<16x128xbf16>, vector<128x128xbf16>, vector<16x128xf32> -> vector<16x128xf32>
    %c0_3 = arith.constant 0 : index
    %c0_4 = arith.constant 0 : index
    %4 = vector.load %arg3[%c0_3, %c0_4] : memref<1x128xf32, #tpu.memory_space<vmem>>, vector<1x128xf32>
    %5 = vector.broadcast %4 : vector<1x128xf32> to vector<16x128xf32>
    %6 = arith.addf %3, %5 : vector<16x128xf32>
    %cst_5 = arith.constant 0.000000e+00 : f32
    %7 = vector.broadcast %cst_5 : f32 to vector<16x128xf32>
    %8 = arith.maximumf %6, %7 : vector<16x128xf32>
    %9 = arith.truncf %8 : vector<16x128xf32> to vector<16x128xbf16>
    %c0_6 = arith.constant 0 : index
    %c0_7 = arith.constant 0 : index
    %10 = vector.load %arg4[%c0_6, %c0_7] : memref<128x128xbf16, #tpu.memory_space<vmem>>, vector<128x128xbf16>
    %cst_8 = arith.constant dense<0.000000e+00> : vector<16x128xf32>
    %11 = tpu.matmul %9, %10, %cst_8 {dimension_numbers = #tpu.dot_dimension_numbers<[1], [0], [0], [1], [0, 0, 1, 1], [], []>} : vector<16x128xbf16>, vector<128x128xbf16>, vector<16x128xf32> -> vector<16x128xf32>
    %c0_9 = arith.constant 0 : index
    %c0_10 = arith.constant 0 : index
    %12 = vector.load %arg5[%c0_9, %c0_10] : memref<1x128xf32, #tpu.memory_space<vmem>>, vector<1x128xf32>
    %13 = vector.broadcast %12 : vector<1x128xf32> to vector<16x128xf32>
    %14 = arith.addf %11, %13 : vector<16x128xf32>
    %cst_11 = arith.constant 0.000000e+00 : f32
    %15 = vector.broadcast %cst_11 : f32 to vector<16x128xf32>
    %16 = arith.maximumf %14, %15 : vector<16x128xf32>
    %17 = arith.truncf %16 : vector<16x128xf32> to vector<16x128xbf16>
    %c0_12 = arith.constant 0 : index
    %c0_13 = arith.constant 0 : index
    %18 = vector.load %arg6[%c0_12, %c0_13] : memref<128x128xbf16, #tpu.memory_space<vmem>>, vector<128x128xbf16>
    %cst_14 = arith.constant dense<0.000000e+00> : vector<16x128xf32>
    %19 = tpu.matmul %17, %18, %cst_14 {dimension_numbers = #tpu.dot_dimension_numbers<[1], [0], [0], [1], [0, 0, 1, 1], [], []>} : vector<16x128xbf16>, vector<128x128xbf16>, vector<16x128xf32> -> vector<16x128xf32>
    %c0_15 = arith.constant 0 : index
    %c0_16 = arith.constant 0 : index
    %20 = vector.load %arg7[%c0_15, %c0_16] : memref<1x128xf32, #tpu.memory_space<vmem>>, vector<1x128xf32>
    %21 = vector.broadcast %20 : vector<1x128xf32> to vector<16x128xf32>
    %22 = arith.addf %19, %21 : vector<16x128xf32>
    %23 = arith.truncf %22 : vector<16x128xf32> to vector<16x128xbf16>
    %c0_17 = arith.constant 0 : index
    %c0_18 = arith.constant 0 : index
    %24 = vector.load %arg8[%c0_17, %c0_18] : memref<16x128xbf16, #tpu.memory_space<vmem>>, vector<16x128xbf16>
    tpu.vector_store %arg8[%c0_17, %c0_18], %23 {strides = array<i32>} : memref<16x128xbf16, #tpu.memory_space<vmem>>, vector<16x128xbf16>,
    return
  }
  func.func @transform_0(%arg0: i32) -> (i32, i32) {
    %c0_i32 = arith.constant 0 : i32
    %c0_i32_0 = arith.constant 0 : i32
    return %arg0, %c0_i32 : i32, i32
  }
  func.func @transform_1(%arg0: i32) -> (i32, i32) {
    %c0_i32 = arith.constant 0 : i32
    %c0_i32_0 = arith.constant 0 : i32
    %c0_i32_1 = arith.constant 0 : i32
    return %c0_i32, %c0_i32_0 : i32, i32
  }
  func.func @transform_2(%arg0: i32) -> (i32, i32) {
    %c0_i32 = arith.constant 0 : i32
    %c0_i32_0 = arith.constant 0 : i32
    %c0_i32_1 = arith.constant 0 : i32
    return %c0_i32, %c0_i32_0 : i32, i32
  }
  func.func @transform_3(%arg0: i32) -> (i32, i32) {
    %c0_i32 = arith.constant 0 : i32
    %c0_i32_0 = arith.constant 0 : i32
    %c0_i32_1 = arith.constant 0 : i32
    return %c0_i32, %c0_i32_0 : i32, i32
  }
  func.func @transform_4(%arg0: i32) -> (i32, i32) {
    %c0_i32 = arith.constant 0 : i32
    %c0_i32_0 = arith.constant 0 : i32
    %c0_i32_1 = arith.constant 0 : i32
    return %c0_i32, %c0_i32_0 : i32, i32
  }
  func.func @transform_5(%arg0: i32) -> (i32, i32) {
    %c0_i32 = arith.constant 0 : i32
    %c0_i32_0 = arith.constant 0 : i32
    %c0_i32_1 = arith.constant 0 : i32
    return %c0_i32, %c0_i32_0 : i32, i32
  }
  func.func @transform_6(%arg0: i32) -> (i32, i32) {
    %c0_i32 = arith.constant 0 : i32
    %c0_i32_0 = arith.constant 0 : i32
    %c0_i32_1 = arith.constant 0 : i32
    return %c0_i32, %c0_i32_0 : i32, i32
  }
  func.func @transform_7(%arg0: i32) -> (i32, i32) {
    %c0_i32 = arith.constant 0 : i32
    %c0_i32_0 = arith.constant 0 : i32
    return %arg0, %c0_i32 : i32, i32
  }
}

module attributes {stable_mosaic.version = 11 : i64} {
  func.func @_classifier_kernel(%arg0: i32, %arg1: memref<16x128xf32, #tpu.memory_space<vmem>>, %arg2: memref<128x128xbf16, #tpu.memory_space<vmem>>, %arg3: memref<1x128xf32, #tpu.memory_space<vmem>>, %arg4: memref<128x128xbf16, #tpu.memory_space<vmem>>, %arg5: memref<1x128xf32, #tpu.memory_space<vmem>>, %arg6: memref<128x128xbf16, #tpu.memory_space<vmem>>, %arg7: memref<1x128xf32, #tpu.memory_space<vmem>>, %arg8: memref<16x128xbf16, #tpu.memory_space<vmem>>) attributes {dimension_semantics = [#tpu.dimension_semantics<parallel>], iteration_bounds = array<i64: 1>, scalar_prefetch = 0 : i64, scratch_operands = 0 : i64, tpu.core_type = #tpu.core_type<tc>, window_params = [{transform_indices = @transform_0, window_bounds = array<i64: 16, 128>}, {pipeline_mode = #tpu.pipeline_mode<synchronous>, transform_indices = @transform_1, window_bounds = array<i64: 128, 128>}, {pipeline_mode = #tpu.pipeline_mode<synchronous>, transform_indices = @transform_2, window_bounds = array<i64: 1, 128>}, {pipeline_mode = #tpu.pipeline_mode<synchronous>, transform_indices = @transform_3, window_bounds = array<i64: 128, 128>}, {pipeline_mode = #tpu.pipeline_mode<synchronous>, transform_indices = @transform_4, window_bounds = array<i64: 1, 128>}, {pipeline_mode = #tpu.pipeline_mode<synchronous>, transform_indices = @transform_5, window_bounds = array<i64: 128, 128>}, {pipeline_mode = #tpu.pipeline_mode<synchronous>, transform_indices = @transform_6, window_bounds = array<i64: 1, 128>}, {transform_indices = @transform_7, window_bounds = array<i64: 16, 128>}]} {
    %c0 = arith.constant 0 : index
    %c0_0 = arith.constant 0 : index
    %0 = vector.load %arg1[%c0, %c0_0] : memref<16x128xf32, #tpu.memory_space<vmem>>, vector<16x128xf32>
    %1 = arith.truncf %0 : vector<16x128xf32> to vector<16x128xbf16>
    %c0_1 = arith.constant 0 : index
    %c0_2 = arith.constant 0 : index
    %2 = vector.load %arg2[%c0_1, %c0_2] : memref<128x128xbf16, #tpu.memory_space<vmem>>, vector<128x128xbf16>
    %cst = arith.constant dense<0.000000e+00> : vector<16x128xf32>
    %3 = tpu.matmul %1, %2, %cst {dimension_numbers = #tpu.dot_dimension_numbers<[1], [0], [0], [1], [0, 0, 1, 1], [], []>} : vector<16x128xbf16>, vector<128x128xbf16>, vector<16x128xf32> -> vector<16x128xf32>
    %c0_3 = arith.constant 0 : index
    %c0_4 = arith.constant 0 : index
    %4 = vector.load %arg3[%c0_3, %c0_4] : memref<1x128xf32, #tpu.memory_space<vmem>>, vector<1x128xf32>
    %5 = vector.broadcast %4 : vector<1x128xf32> to vector<16x128xf32>
    %6 = arith.addf %3, %5 : vector<16x128xf32>
    %cst_5 = arith.constant 0.000000e+00 : f32
    %7 = vector.broadcast %cst_5 : f32 to vector<16x128xf32>
    %8 = arith.maximumf %6, %7 : vector<16x128xf32>
    %9 = arith.truncf %8 : vector<16x128xf32> to vector<16x128xbf16>
    %c0_6 = arith.constant 0 : index
    %c0_7 = arith.constant 0 : index
    %10 = vector.load %arg4[%c0_6, %c0_7] : memref<128x128xbf16, #tpu.memory_space<vmem>>, vector<128x128xbf16>
    %cst_8 = arith.constant dense<0.000000e+00> : vector<16x128xf32>
    %11 = tpu.matmul %9, %10, %cst_8 {dimension_numbers = #tpu.dot_dimension_numbers<[1], [0], [0], [1], [0, 0, 1, 1], [], []>} : vector<16x128xbf16>, vector<128x128xbf16>, vector<16x128xf32> -> vector<16x128xf32>
    %c0_9 = arith.constant 0 : index
    %c0_10 = arith.constant 0 : index
    %12 = vector.load %arg5[%c0_9, %c0_10] : memref<1x128xf32, #tpu.memory_space<vmem>>, vector<1x128xf32>
    %13 = vector.broadcast %12 : vector<1x128xf32> to vector<16x128xf32>
    %14 = arith.addf %11, %13 : vector<16x128xf32>
    %cst_11 = arith.constant 0.000000e+00 : f32
    %15 = vector.broadcast %cst_11 : f32 to vector<16x128xf32>
    %16 = arith.maximumf %14, %15 : vector<16x128xf32>
    %17 = arith.truncf %16 : vector<16x128xf32> to vector<16x128xbf16>
    %c0_12 = arith.constant 0 : index
    %c0_13 = arith.constant 0 : index
    %18 = vector.load %arg6[%c0_12, %c0_13] : memref<128x128xbf16, #tpu.memory_space<vmem>>, vector<128x128xbf16>
    %cst_14 = arith.constant dense<0.000000e+00> : vector<16x128xf32>
    %19 = tpu.matmul %17, %18, %cst_14 {dimension_numbers = #tpu.dot_dimension_numbers<[1], [0], [0], [1], [0, 0, 1, 1], [], []>} : vector<16x128xbf16>, vector<128x128xbf16>, vector<16x128xf32> -> vector<16x128xf32>
    %c0_15 = arith.constant 0 : index
    %c0_16 = arith.constant 0 : index
    %20 = vector.load %arg7[%c0_15, %c0_16] : memref<1x128xf32, #tpu.memory_space<vmem>>, vector<1x128xf32>
    %21 = vector.broadcast %20 : vector<1x128xf32> to vector<16x128xf32>
    %22 = arith.addf %19, %21 : vector<16x128xf32>
    %23 = arith.truncf %22 : vector<16x128xf32> to vector<16x128xbf16>
    %c0_17 = arith.constant 0 : index
    %c0_18 = arith.constant 0 : index
    %24 = vector.load %arg8[%c0_17, %c0_18] : memref<16x128xbf16, #tpu.memory_space<vmem>>, vector<16x128xbf16>
    tpu.vector_store %arg8[%c0_17, %c0_18], %23 {strides = array<i32>} : memref<16x128xbf16, #tpu.memory_space<vmem>>, vector<16x128xbf16>,
    return
  }
  func.func @transform_0(%arg0: i32) -> (i32, i32) {
    %c0_i32 = arith.constant 0 : i32
    %c0_i32_0 = arith.constant 0 : i32
    return %arg0, %c0_i32 : i32, i32
  }
  func.func @transform_1(%arg0: i32) -> (i32, i32) {
    %c0_i32 = arith.constant 0 : i32
    %c0_i32_0 = arith.constant 0 : i32
    %c0_i32_1 = arith.constant 0 : i32
    return %c0_i32, %c0_i32_0 : i32, i32
  }
  func.func @transform_2(%arg0: i32) -> (i32, i32) {
    %c0_i32 = arith.constant 0 : i32
    %c0_i32_0 = arith.constant 0 : i32
    %c0_i32_1 = arith.constant 0 : i32
    return %c0_i32, %c0_i32_0 : i32, i32
  }
  func.func @transform_3(%arg0: i32) -> (i32, i32) {
    %c0_i32 = arith.constant 0 : i32
    %c0_i32_0 = arith.constant 0 : i32
    %c0_i32_1 = arith.constant 0 : i32
    return %c0_i32, %c0_i32_0 : i32, i32
  }
  func.func @transform_4(%arg0: i32) -> (i32, i32) {
    %c0_i32 = arith.constant 0 : i32
    %c0_i32_0 = arith.constant 0 : i32
    %c0_i32_1 = arith.constant 0 : i32
    return %c0_i32, %c0_i32_0 : i32, i32
  }
  func.func @transform_5(%arg0: i32) -> (i32, i32) {
    %c0_i32 = arith.constant 0 : i32
    %c0_i32_0 = arith.constant 0 : i32
    %c0_i32_1 = arith.constant 0 : i32
    return %c0_i32, %c0_i32_0 : i32, i32
  }
  func.func @transform_6(%arg0: i32) -> (i32, i32) {
    %c0_i32 = arith.constant 0 : i32
    %c0_i32_0 = arith.constant 0 : i32
    %c0_i32_1 = arith.constant 0 : i32
    return %c0_i32, %c0_i32_0 : i32, i32
  }
  func.func @transform_7(%arg0: i32) -> (i32, i32) {
    %c0_i32 = arith.constant 0 : i32
    %c0_i32_0 = arith.constant 0 : i32
    return %arg0, %c0_i32 : i32, i32
  }
}

</mosaic_0001>

<bundles_post_ra>
// kernel: tpu_custom_call.1
= control target key start
LH: loop header
LB: loop body
LE: loop exit
PB: predicated region body
PF: predicated region fallthrough
CT: control target
= control target key end

     0   :  { %12 = vsyncpa [#allocation3], 0  ;;  %s840_s0 = inlined_call_operand.hbm [shape: f32[16,128], index: 0, kind: input, shape index: {}]   ;;  %s841_s1 = inlined_call_operand.hbm [shape: bf16[128,128], index: 1, kind: input, shape index: {}]   ;;  %s842_s2 = inlined_call_operand.vmem [shape: f32[1,128], index: 2, kind: input, shape index: {}]   ;;  %s843_s3 = inlined_call_operand.hbm [shape: bf16[128,128], index: 3, kind: input, shape index: {}]   ;;  %s844_s4 = inlined_call_operand.vmem [shape: f32[1,128], index: 4, kind: input, shape index: {}]   ;;  %s845_s5 = inlined_call_operand.hbm [shape: bf16[128,128], index: 5, kind: input, shape index: {}]   ;;  %s846_s6 = inlined_call_operand.vmem [shape: f32[1,128], index: 6, kind: input, shape index: {}]   ;;  %s847_s7 = inlined_call_operand.hbm [shape: bf16[16,128], index: 7, kind: output, shape index: {}]  }
   0x1   :  { %13 = vsyncpa [#allocation6], 0 }
   0x2   :  { %14 = vsyncpa [#allocation9], 0 }
   0x3   :  { %15 = vsyncpa [#allocation4], 0  ;;  %s723_s24 = smov [#allocation5]  }
   0x4   :  { %s33_s25 = sshll.u32 %s723_s24, 4  ;;  %s34_s25 = int_to_ptr.vmem [resolvable:$true] %s33_s25 }
   0x5   :  { %s623_s26 = scalar_lea.vmem %s34_s25, 1024  ;;  %p628_p1 = scmp.lt.s32.totalorder %s34_s25, %s34_s25 }
   0x6   :  { %p624_p0 = scmp.ne.s32.totalorder %s34_s25, %s623_s26  ;;  %p629_p2 = scmp.lt.s32.totalorder %s623_s26, %s623_s26 }
   0x8   :  { %p630_p3 = por %p629_p2, %p628_p1 }
   0xa   :  { %p631_p4 = pnand %p630_p3, %p624_p0 }
   0xc   :  { %634 = shalt.err (!%p631_p4)
}
   0xd   :  { %s724_s27 = smov 64   ;;  %s725_s28 = smov 4  }
   0xe   :  { %39 = dma.hbm_to_vmem [thread:$0]  %s841_s1, 1024, %s34_s25, [#allocation6], %s724_s27, %s724_s27, %s725_s28  }
   0xf   :  { %s726_s8 = smov [#allocation2]  }
  0x10   :  { %s21_s9 = sshll.u32 %s726_s8, 4  ;;  %s22_s9 = int_to_ptr.vmem [resolvable:$true] %s21_s9 }
  0x11   :  { %s643_s10 = scalar_lea.vmem %s22_s9, 256  ;;  %p648_p6 = scmp.lt.s32.totalorder %s22_s9, %s22_s9 }
  0x12   :  { %p644_p5 = scmp.ne.s32.totalorder %s22_s9, %s643_s10  ;;  %p649_p7 = scmp.lt.s32.totalorder %s643_s10, %s643_s10 }
  0x14   :  { %p650_p8 = por %p649_p7, %p648_p6 }
  0x16   :  { %p651_p9 = pnand %p650_p8, %p644_p5 }
  0x18   :  { %654 = shalt.err (!%p651_p9)
}
  0x19   :  { %s727_s11 = smov 128   ;;  %s728_s12 = smov 8  }
  0x1a   :  { %27 = dma.hbm_to_vmem [thread:$0]  %s840_s0, 256, %s22_s9, [#allocation3], %s727_s11, %s727_s11, %s728_s12  }
  0x1b   :  { %s729_s15 = smov [#allocation7]   ;;  %s730_s17 = smov [#allocation8]  }
  0x1c   :  { %s47_s16 = sshll.u32 %s729_s15, 4  ;;  %s61_s1 = sshll.u32 %s730_s17, 4  ;;  %s48_s16 = int_to_ptr.vmem [resolvable:$true] %s47_s16  ;;  %s62_s1 = int_to_ptr.vmem [resolvable:$true] %s61_s1 }
  0x1d   :  { %s663_s18 = scalar_lea.vmem %s48_s16, 1024  ;;  %p668_p11 = scmp.lt.s32.totalorder %s48_s16, %s48_s16 }
  0x1e   :  { %p664_p10 = scmp.ne.s32.totalorder %s48_s16, %s663_s18  ;;  %p669_p12 = scmp.lt.s32.totalorder %s663_s18, %s663_s18 }
  0x20   :  { %p670_p13 = por %p669_p12, %p668_p11 }
  0x22   :  { %p671_p0 = pnand %p670_p13, %p664_p10 }
  0x24   :  { %674 = shalt.err (!%p671_p0)
}
  0x25   :  { %53 = dma.hbm_to_vmem [thread:$0]  %s843_s3, 1024, %s48_s16, [#allocation6], %s724_s27, %s724_s27, %s725_s28  }
  0x26   :  { %s683_s0 = scalar_lea.vmem %s62_s1, 1024  ;;  %p688_p2 = scmp.lt.s32.totalorder %s62_s1, %s62_s1 }
  0x27   :  { %p684_p1 = scmp.ne.s32.totalorder %s62_s1, %s683_s0  ;;  %p689_p3 = scmp.lt.s32.totalorder %s683_s0, %s683_s0 }
  0x29   :  { %p690_p4 = por %p689_p3, %p688_p2 }
  0x2b   :  { %p691_p5 = pnand %p690_p4, %p684_p1 }
  0x2d   :  { %694 = shalt.err (!%p691_p5)
}
  0x2e   :  { %67 = dma.hbm_to_vmem [thread:$0]  %s845_s5, 1024, %s62_s1, [#allocation9], %s724_s27, %s724_s27, %s725_s28  }
  0x2f   :  { %715 = dma.done.wait [#allocation3], 256  }
  0x30   :  { %716 = vsyncadd [#allocation3], 4294967040 }
  0x31   :  { %717 = dma.done.wait [#allocation6], 2048  }
  0x32   :  { %718 = vsyncadd [#allocation6], 4294965248 }
  0x33   :  { %719 = dma.done.wait [#allocation9], 1024  }
  0x34   :  { %720 = vsyncadd [#allocation9], 4294966272  ;;  %v731_v0 = vmov 0.0   ;;  %vm732_vm0 = vmmov 0   ;;  %v591_v1 = vld [vmem:[#allocation5 + $0x38] sm:$0xff]   ;;  %v592_v2 = vld [vmem:[#allocation5 + $0x30] sm:$0xff]  }
  0x35   :  { %520 = vmatprep.subr.bf16.mxu0 %v731_v0  ;;  %536 = vmatprep.mubr.msk.bf16.mxu0 %vm732_vm0, %v731_v0  ;;  %v593_v3 = vld [vmem:[#allocation5 + $0x28] sm:$0xff]   ;;  %v599_v4 = vld [vmem:[#allocation7 + $0x38] sm:$0xff]   ;;  %v594_v5 = vld [vmem:[#allocation5 + $0x20] sm:$0xff]   ;;  %s733_s26 = smov [#allocation10]  }
  0x36   :  { %540 = vmatprep.subr.bf16.mxu1 %v731_v0  ;;  %556 = vmatprep.mubr.msk.bf16.mxu1 %vm732_vm0, %v731_v0  ;;  %v600_v6 = vld [vmem:[#allocation7 + $0x30] sm:$0xff]   ;;  %v595_v7 = vld [vmem:[#allocation5 + $0x18] sm:$0xff]   ;;  %v601_v8 = vld [vmem:[#allocation7 + $0x28] sm:$0xff]   ;;  %s443_s29 = sshll.u32 %s733_s26, 4  ;;  %s444_s29 = int_to_ptr.vmem [resolvable:$true] %s443_s29 }
  0x37   :  { %521 = vmatpush3.bf16.msra.mxu0 %v591_v1  ;;  %541 = vmatpush3.bf16.msra.mxu1 %v599_v4  ;;  %v596_v9 = vld [vmem:[#allocation5 + $0x10] sm:$0xff]   ;;  %v602_v10 = vld [vmem:[#allocation7 + $0x20] sm:$0xff]   ;;  %v597_v11 = vld [vmem:[#allocation5 + $0x8] sm:$0xff]   ;;  %p700_p7 = scmp.lt.s32.totalorder %s444_s29, %s444_s29 }
  0x38   :  { %522 = vmatprep.subr.bf16.mxu0 %v731_v0  ;;  %542 = vmatprep.subr.bf16.mxu1 %v731_v0  ;;  %v603_v12 = vld [vmem:[#allocation7 + $0x18] sm:$0xff]   ;;  %v598_v13 = vld [vmem:[#allocation5] sm:$0xff]   ;;  %v83_v14 = vld [vmem:[#allocation2] sm:$0xff] }
  0x39   :  { %v84_v15 = vld [vmem:[#allocation2 + $0x8] sm:$0xff]  ;;  %v604_v17 = vld [vmem:[#allocation7 + $0x10] sm:$0xff]   ;;  %v605_v18 = vld [vmem:[#allocation7 + $0x8] sm:$0xff]  }
  0x3a   :  { %v85_v16 = vpack.c.bf16 %v84_v15, %v83_v14  ;;  %v606_v19 = vld [vmem:[#allocation7] sm:$0xff]   ;;  %v607_v20 = vld [vmem:[#allocation8 + $0x38] sm:$0xff]   ;;  %v608_v21 = vld [vmem:[#allocation8 + $0x30] sm:$0xff]  }
  0x3b   :  { %523 = vmatpush3.bf16.msra.mxu0 %v592_v2  ;;  %543 = vmatpush3.bf16.msra.mxu1 %v600_v6  ;;  %v609_v22 = vld [vmem:[#allocation8 + $0x28] sm:$0xff]   ;;  %v610_v23 = vld [vmem:[#allocation8 + $0x20] sm:$0xff]   ;;  %v611_v24 = vld [vmem:[#allocation8 + $0x18] sm:$0xff]  }
  0x3c   :  { %524 = vmatprep.subr.bf16.mxu0 %v731_v0  ;;  %544 = vmatprep.subr.bf16.mxu1 %v731_v0  ;;  %v457_v25 = vld [vmem:[%s842_s2] ss:$0 sm:$0xff]  ;;  %v613_v36 = vld [vmem:[#allocation8 + $0x8] sm:$0xff]   ;;  %v614_v37 = vld [vmem:[#allocation8] sm:$0xff]  }
  0x3d   :  { %v612_v35 = vld [vmem:[#allocation8 + $0x10] sm:$0xff]  }
  0x3e   :  { %v466_v38 = vld [vmem:[%s844_s4] ss:$0 sm:$0xff]  ;;  %s695_s4 = scalar_lea.vmem %s444_s29, 128 }
  0x3f   :  { %525 = vmatpush3.bf16.msra.mxu0 %v593_v3  ;;  %545 = vmatpush3.bf16.msra.mxu1 %v601_v8  ;;  %v475_v49 = vld [vmem:[%s846_s6] ss:$0 sm:$0xff]  ;;  %p696_p6 = scmp.ne.s32.totalorder %s444_s29, %s695_s4  ;;  %p701_p8 = scmp.lt.s32.totalorder %s695_s4, %s695_s4 }
  0x40   :  { %526 = vmatprep.subr.bf16.mxu0 %v731_v0  ;;  %546 = vmatprep.subr.bf16.mxu1 %v731_v0 }
  0x41   :  { %p702_p9 = por %p701_p8, %p700_p7 }
  0x43   :  { %527 = vmatpush3.bf16.msra.mxu0 %v594_v5  ;;  %547 = vmatpush3.bf16.msra.mxu1 %v602_v10  ;;  %p703_p10 = pnand %p702_p9, %p696_p6 }
  0x44   :  { %528 = vmatprep.subr.bf16.mxu0 %v731_v0  ;;  %548 = vmatprep.subr.bf16.mxu1 %v731_v0 }
  0x47   :  { %529 = vmatpush3.bf16.msra.mxu0 %v595_v7  ;;  %549 = vmatpush3.bf16.msra.mxu1 %v603_v12 }
  0x48   :  { %530 = vmatprep.subr.bf16.mxu0 %v731_v0  ;;  %550 = vmatprep.subr.bf16.mxu1 %v731_v0 }
  0x4b   :  { %531 = vmatpush3.bf16.msra.mxu0 %v596_v9  ;;  %551 = vmatpush3.bf16.msra.mxu1 %v604_v17 }
  0x4c   :  { %532 = vmatprep.subr.bf16.mxu0 %v731_v0  ;;  %552 = vmatprep.subr.bf16.mxu1 %v731_v0 }
  0x4f   :  { %533 = vmatpush3.bf16.msra.mxu0 %v597_v11  ;;  %553 = vmatpush3.bf16.msra.mxu1 %v605_v18 }
  0x50   :  { %534 = vmatprep.subr.bf16.mxu0 %v731_v0  ;;  %554 = vmatprep.subr.bf16.mxu1 %v731_v0 }
  0x53   :  { %535 = vmatpush3.bf16.msra.mxu0 %v598_v13  ;;  %555 = vmatpush3.bf16.msra.mxu1 %v606_v19 }
  0x54   :  { %560 = vmatprep.subr.bf16.mxu0 %v731_v0 }
  0x56   :  { %537 = vmatmul.mubr.bf16.vlgmr.msra.gmra.mxu0 %v85_v16 }
  0x57   :  { %576 = vmatprep.mubr.msk.bf16.mxu0 %vm732_vm0, %v731_v0  ;;  %561 = vmatpush3.bf16.msra.mxu0 %v607_v20 }
  0x58   :  { %562 = vmatprep.subr.bf16.mxu0 %v731_v0 }
  0x5b   :  { %563 = vmatpush3.bf16.msra.mxu0 %v608_v21 }
  0x5c   :  { %564 = vmatprep.subr.bf16.mxu0 %v731_v0 }
  0x5f   :  { %565 = vmatpush3.bf16.msra.mxu0 %v609_v22 }
  0x60   :  { %566 = vmatprep.subr.bf16.mxu0 %v731_v0 }
  0x63   :  { %567 = vmatpush3.bf16.msra.mxu0 %v610_v23 }
  0x64   :  { %568 = vmatprep.subr.bf16.mxu0 %v731_v0 }
  0x67   :  { %569 = vmatpush3.bf16.msra.mxu0 %v611_v24 }
  0x68   :  { %570 = vmatprep.subr.bf16.mxu0 %v731_v0 }
  0x6b   :  { %571 = vmatpush3.bf16.msra.mxu0 %v612_v35 }
  0x6c   :  { %572 = vmatprep.subr.bf16.mxu0 %v731_v0 }
  0x6f   :  { %573 = vmatpush3.bf16.msra.mxu0 %v613_v36 }
  0x70   :  { %574 = vmatprep.subr.bf16.mxu0 %v731_v0 }
  0x73   :  { %575 = vmatpush3.bf16.msra.mxu0 %v614_v37 }
 0x116   :  { %v191_v26 = vpop.f32.mrf.mxu0 }
 0x117   :  { %v192_v28 = vadd.f32 %v457_v25, %v191_v26 }
 0x118   :  { %v538_v27 = vpop.f32.mrf.mxu0 }
 0x119   :  { %v198_v32 = vmax.f32 %v192_v28, 0.0 }
 0x11a   :  { %v194_v29 = vpop.f32.mrf.mxu0 }
 0x11b   :  { %v195_v30 = vadd.f32 %v457_v25, %v194_v29 }
 0x11c   :  { %v539_v31 = vpop.f32.mrf.mxu0 }
 0x11d   :  { %v199_v33 = vmax.f32 %v195_v30, 0.0 }
 0x11f   :  { %v200_v34 = vpack.c.bf16 %v199_v33, %v198_v32 }
 0x121   :  { %557 = vmatmul.mubr.bf16.vlgmr.msra.gmra.mxu1 %v200_v34 }
 0x1e1   :  { %v306_v39 = vpop.f32.mrf.mxu1 }
 0x1e2   :  { %v307_v41 = vadd.f32 %v466_v38, %v306_v39 }
 0x1e3   :  { %v558_v40 = vpop.f32.mrf.mxu1 }
 0x1e4   :  { %v313_v45 = vmax.f32 %v307_v41, 0.0 }
 0x1e5   :  { %v309_v42 = vpop.f32.mrf.mxu1 }
 0x1e6   :  { %v310_v43 = vadd.f32 %v466_v38, %v309_v42 }
 0x1e7   :  { %v559_v44 = vpop.f32.mrf.mxu1 }
 0x1e8   :  { %v314_v46 = vmax.f32 %v310_v43, 0.0 }
 0x1ea   :  { %v315_v47 = vpack.c.bf16 %v314_v46, %v313_v45 }
 0x1ec   :  { %577 = vmatmul.mubr.bf16.vlgmr.msra.gmra.mxu0 %v315_v47 }
 0x2ac   :  { %v421_v48 = vpop.f32.mrf.mxu0 }
 0x2ad   :  { %v422_v52 = vadd.f32 %v475_v49, %v421_v48 }
 0x2ae   :  { %v578_v50 = vpop.f32.mrf.mxu0 }
 0x2b0   :  { %v424_v51 = vpop.f32.mrf.mxu0 }
 0x2b1   :  { %v425_v53 = vadd.f32 %v475_v49, %v424_v51 }
 0x2b2   :  { %v579_v54 = vpop.f32.mrf.mxu0 }
 0x2b3   :  { %v491_v55 = vpack.c.bf16 %v425_v53, %v422_v52 }
 0x2b5   :  { %492 = vst [vmem:[#allocation10] sm:$0xff] %v491_v55  }
 0x2b6   :  { %706 = shalt.err (!%p703_p10)
}
 0x2b7   :  { %449 = dma.vmem_to_hbm [thread:$0]  %s444_s29, 128, %s847_s7, [#allocation4], %s724_s27, %s724_s27, %s725_s28  }
 0x2b8   :  { %721 = dma.done.wait [#allocation4], 128  }
 0x2b9   :  { %722 = vsyncadd [#allocation4], 4294967168 }
 0x2ba   :  { %453 = vsyncpa [#allocation3], 1 }
 0x2bb   :  { %454 = vsyncpa [#allocation6], 1 }
 0x2bc   :  { %455 = vsyncpa [#allocation9], 1 }
 0x2bd   :  { %456 = vsyncpa [#allocation4], 1 }

// kernel: tpu_custom_call.1
= control target key start
LH: loop header
LB: loop body
LE: loop exit
PB: predicated region body
PF: predicated region fallthrough
CT: control target
= control target key end

     0   :  { %12 = vsyncpa [#allocation3], 0  ;;  %s840_s0 = inlined_call_operand.hbm [shape: f32[16,128], index: 0, kind: input, shape index: {}]   ;;  %s841_s1 = inlined_call_operand.hbm [shape: bf16[128,128], index: 1, kind: input, shape index: {}]   ;;  %s842_s2 = inlined_call_operand.vmem [shape: f32[1,128], index: 2, kind: input, shape index: {}]   ;;  %s843_s3 = inlined_call_operand.hbm [shape: bf16[128,128], index: 3, kind: input, shape index: {}]   ;;  %s844_s4 = inlined_call_operand.vmem [shape: f32[1,128], index: 4, kind: input, shape index: {}]   ;;  %s845_s5 = inlined_call_operand.hbm [shape: bf16[128,128], index: 5, kind: input, shape index: {}]   ;;  %s846_s6 = inlined_call_operand.vmem [shape: f32[1,128], index: 6, kind: input, shape index: {}]   ;;  %s847_s7 = inlined_call_operand.hbm [shape: bf16[16,128], index: 7, kind: output, shape index: {}]  }
   0x1   :  { %13 = vsyncpa [#allocation6], 0 }
   0x2   :  { %14 = vsyncpa [#allocation9], 0 }
   0x3   :  { %15 = vsyncpa [#allocation4], 0  ;;  %s723_s24 = smov [#allocation5]  }
   0x4   :  { %s33_s25 = sshll.u32 %s723_s24, 4  ;;  %s34_s25 = int_to_ptr.vmem [resolvable:$true] %s33_s25 }
   0x5   :  { %s623_s26 = scalar_lea.vmem %s34_s25, 1024  ;;  %p628_p1 = scmp.lt.s32.totalorder %s34_s25, %s34_s25 }
   0x6   :  { %p624_p0 = scmp.ne.s32.totalorder %s34_s25, %s623_s26  ;;  %p629_p2 = scmp.lt.s32.totalorder %s623_s26, %s623_s26 }
   0x8   :  { %p630_p3 = por %p629_p2, %p628_p1 }
   0xa   :  { %p631_p4 = pnand %p630_p3, %p624_p0 }
   0xc   :  { %634 = shalt.err (!%p631_p4)
}
   0xd   :  { %s724_s27 = smov 64   ;;  %s725_s28 = smov 4  }
   0xe   :  { %39 = dma.hbm_to_vmem [thread:$0]  %s841_s1, 1024, %s34_s25, [#allocation6], %s724_s27, %s724_s27, %s725_s28  }
   0xf   :  { %s726_s8 = smov [#allocation2]  }
  0x10   :  { %s21_s9 = sshll.u32 %s726_s8, 4  ;;  %s22_s9 = int_to_ptr.vmem [resolvable:$true] %s21_s9 }
  0x11   :  { %s643_s10 = scalar_lea.vmem %s22_s9, 256  ;;  %p648_p6 = scmp.lt.s32.totalorder %s22_s9, %s22_s9 }
  0x12   :  { %p644_p5 = scmp.ne.s32.totalorder %s22_s9, %s643_s10  ;;  %p649_p7 = scmp.lt.s32.totalorder %s643_s10, %s643_s10 }
  0x14   :  { %p650_p8 = por %p649_p7, %p648_p6 }
  0x16   :  { %p651_p9 = pnand %p650_p8, %p644_p5 }
  0x18   :  { %654 = shalt.err (!%p651_p9)
}
  0x19   :  { %s727_s11 = smov 128   ;;  %s728_s12 = smov 8  }
  0x1a   :  { %27 = dma.hbm_to_vmem [thread:$0]  %s840_s0, 256, %s22_s9, [#allocation3], %s727_s11, %s727_s11, %s728_s12  }
  0x1b   :  { %s729_s15 = smov [#allocation7]   ;;  %s730_s17 = smov [#allocation8]  }
  0x1c   :  { %s47_s16 = sshll.u32 %s729_s15, 4  ;;  %s61_s1 = sshll.u32 %s730_s17, 4  ;;  %s48_s16 = int_to_ptr.vmem [resolvable:$true] %s47_s16  ;;  %s62_s1 = int_to_ptr.vmem [resolvable:$true] %s61_s1 }
  0x1d   :  { %s663_s18 = scalar_lea.vmem %s48_s16, 1024  ;;  %p668_p11 = scmp.lt.s32.totalorder %s48_s16, %s48_s16 }
  0x1e   :  { %p664_p10 = scmp.ne.s32.totalorder %s48_s16, %s663_s18  ;;  %p669_p12 = scmp.lt.s32.totalorder %s663_s18, %s663_s18 }
  0x20   :  { %p670_p13 = por %p669_p12, %p668_p11 }
  0x22   :  { %p671_p0 = pnand %p670_p13, %p664_p10 }
  0x24   :  { %674 = shalt.err (!%p671_p0)
}
  0x25   :  { %53 = dma.hbm_to_vmem [thread:$0]  %s843_s3, 1024, %s48_s16, [#allocation6], %s724_s27, %s724_s27, %s725_s28  }
  0x26   :  { %s683_s0 = scalar_lea.vmem %s62_s1, 1024  ;;  %p688_p2 = scmp.lt.s32.totalorder %s62_s1, %s62_s1 }
  0x27   :  { %p684_p1 = scmp.ne.s32.totalorder %s62_s1, %s683_s0  ;;  %p689_p3 = scmp.lt.s32.totalorder %s683_s0, %s683_s0 }
  0x29   :  { %p690_p4 = por %p689_p3, %p688_p2 }
  0x2b   :  { %p691_p5 = pnand %p690_p4, %p684_p1 }
  0x2d   :  { %694 = shalt.err (!%p691_p5)
}
  0x2e   :  { %67 = dma.hbm_to_vmem [thread:$0]  %s845_s5, 1024, %s62_s1, [#allocation9], %s724_s27, %s724_s27, %s725_s28  }
  0x2f   :  { %715 = dma.done.wait [#allocation3], 256  }
  0x30   :  { %716 = vsyncadd [#allocation3], 4294967040 }
  0x31   :  { %717 = dma.done.wait [#allocation6], 2048  }
  0x32   :  { %718 = vsyncadd [#allocation6], 4294965248 }
  0x33   :  { %719 = dma.done.wait [#allocation9], 1024  }
  0x34   :  { %720 = vsyncadd [#allocation9], 4294966272  ;;  %v731_v0 = vmov 0.0   ;;  %vm732_vm0 = vmmov 0   ;;  %v591_v1 = vld [vmem:[#allocation5 + $0x38] sm:$0xff]   ;;  %v592_v2 = vld [vmem:[#allocation5 + $0x30] sm:$0xff]  }
  0x35   :  { %520 = vmatprep.subr.bf16.mxu0 %v731_v0  ;;  %536 = vmatprep.mubr.msk.bf16.mxu0 %vm732_vm0, %v731_v0  ;;  %v593_v3 = vld [vmem:[#allocation5 + $0x28] sm:$0xff]   ;;  %v599_v4 = vld [vmem:[#allocation7 + $0x38] sm:$0xff]   ;;  %v594_v5 = vld [vmem:[#allocation5 + $0x20] sm:$0xff]   ;;  %s733_s26 = smov [#allocation10]  }
  0x36   :  { %540 = vmatprep.subr.bf16.mxu1 %v731_v0  ;;  %556 = vmatprep.mubr.msk.bf16.mxu1 %vm732_vm0, %v731_v0  ;;  %v600_v6 = vld [vmem:[#allocation7 + $0x30] sm:$0xff]   ;;  %v595_v7 = vld [vmem:[#allocation5 + $0x18] sm:$0xff]   ;;  %v601_v8 = vld [vmem:[#allocation7 + $0x28] sm:$0xff]   ;;  %s443_s29 = sshll.u32 %s733_s26, 4  ;;  %s444_s29 = int_to_ptr.vmem [resolvable:$true] %s443_s29 }
  0x37   :  { %521 = vmatpush3.bf16.msra.mxu0 %v591_v1  ;;  %541 = vmatpush3.bf16.msra.mxu1 %v599_v4  ;;  %v596_v9 = vld [vmem:[#allocation5 + $0x10] sm:$0xff]   ;;  %v602_v10 = vld [vmem:[#allocation7 + $0x20] sm:$0xff]   ;;  %v597_v11 = vld [vmem:[#allocation5 + $0x8] sm:$0xff]   ;;  %p700_p7 = scmp.lt.s32.totalorder %s444_s29, %s444_s29 }
  0x38   :  { %522 = vmatprep.subr.bf16.mxu0 %v731_v0  ;;  %542 = vmatprep.subr.bf16.mxu1 %v731_v0  ;;  %v603_v12 = vld [vmem:[#allocation7 + $0x18] sm:$0xff]   ;;  %v598_v13 = vld [vmem:[#allocation5] sm:$0xff]   ;;  %v83_v14 = vld [vmem:[#allocation2] sm:$0xff] }
  0x39   :  { %v84_v15 = vld [vmem:[#allocation2 + $0x8] sm:$0xff]  ;;  %v604_v17 = vld [vmem:[#allocation7 + $0x10] sm:$0xff]   ;;  %v605_v18 = vld [vmem:[#allocation7 + $0x8] sm:$0xff]  }
  0x3a   :  { %v85_v16 = vpack.c.bf16 %v84_v15, %v83_v14  ;;  %v606_v19 = vld [vmem:[#allocation7] sm:$0xff]   ;;  %v607_v20 = vld [vmem:[#allocation8 + $0x38] sm:$0xff]   ;;  %v608_v21 = vld [vmem:[#allocation8 + $0x30] sm:$0xff]  }
  0x3b   :  { %523 = vmatpush3.bf16.msra.mxu0 %v592_v2  ;;  %543 = vmatpush3.bf16.msra.mxu1 %v600_v6  ;;  %v609_v22 = vld [vmem:[#allocation8 + $0x28] sm:$0xff]   ;;  %v610_v23 = vld [vmem:[#allocation8 + $0x20] sm:$0xff]   ;;  %v611_v24 = vld [vmem:[#allocation8 + $0x18] sm:$0xff]  }
  0x3c   :  { %524 = vmatprep.subr.bf16.mxu0 %v731_v0  ;;  %544 = vmatprep.subr.bf16.mxu1 %v731_v0  ;;  %v457_v25 = vld [vmem:[%s842_s2] ss:$0 sm:$0xff]  ;;  %v613_v36 = vld [vmem:[#allocation8 + $0x8] sm:$0xff]   ;;  %v614_v37 = vld [vmem:[#allocation8] sm:$0xff]  }
  0x3d   :  { %v612_v35 = vld [vmem:[#allocation8 + $0x10] sm:$0xff]  }
  0x3e   :  { %v466_v38 = vld [vmem:[%s844_s4] ss:$0 sm:$0xff]  ;;  %s695_s4 = scalar_lea.vmem %s444_s29, 128 }
  0x3f   :  { %525 = vmatpush3.bf16.msra.mxu0 %v593_v3  ;;  %545 = vmatpush3.bf16.msra.mxu1 %v601_v8  ;;  %v475_v49 = vld [vmem:[%s846_s6] ss:$0 sm:$0xff]  ;;  %p696_p6 = scmp.ne.s32.totalorder %s444_s29, %s695_s4  ;;  %p701_p8 = scmp.lt.s32.totalorder %s695_s4, %s695_s4 }
  0x40   :  { %526 = vmatprep.subr.bf16.mxu0 %v731_v0  ;;  %546 = vmatprep.subr.bf16.mxu1 %v731_v0 }
  0x41   :  { %p702_p9 = por %p701_p8, %p700_p7 }
  0x43   :  { %527 = vmatpush3.bf16.msra.mxu0 %v594_v5  ;;  %547 = vmatpush3.bf16.msra.mxu1 %v602_v10  ;;  %p703_p10 = pnand %p702_p9, %p696_p6 }
  0x44   :  { %528 = vmatprep.subr.bf16.mxu0 %v731_v0  ;;  %548 = vmatprep.subr.bf16.mxu1 %v731_v0 }
  0x47   :  { %529 = vmatpush3.bf16.msra.mxu0 %v595_v7  ;;  %549 = vmatpush3.bf16.msra.mxu1 %v603_v12 }
  0x48   :  { %530 = vmatprep.subr.bf16.mxu0 %v731_v0  ;;  %550 = vmatprep.subr.bf16.mxu1 %v731_v0 }
  0x4b   :  { %531 = vmatpush3.bf16.msra.mxu0 %v596_v9  ;;  %551 = vmatpush3.bf16.msra.mxu1 %v604_v17 }
  0x4c   :  { %532 = vmatprep.subr.bf16.mxu0 %v731_v0  ;;  %552 = vmatprep.subr.bf16.mxu1 %v731_v0 }
  0x4f   :  { %533 = vmatpush3.bf16.msra.mxu0 %v597_v11  ;;  %553 = vmatpush3.bf16.msra.mxu1 %v605_v18 }
  0x50   :  { %534 = vmatprep.subr.bf16.mxu0 %v731_v0  ;;  %554 = vmatprep.subr.bf16.mxu1 %v731_v0 }
  0x53   :  { %535 = vmatpush3.bf16.msra.mxu0 %v598_v13  ;;  %555 = vmatpush3.bf16.msra.mxu1 %v606_v19 }
  0x54   :  { %560 = vmatprep.subr.bf16.mxu0 %v731_v0 }
  0x56   :  { %537 = vmatmul.mubr.bf16.vlgmr.msra.gmra.mxu0 %v85_v16 }
  0x57   :  { %576 = vmatprep.mubr.msk.bf16.mxu0 %vm732_vm0, %v731_v0  ;;  %561 = vmatpush3.bf16.msra.mxu0 %v607_v20 }
  0x58   :  { %562 = vmatprep.subr.bf16.mxu0 %v731_v0 }
  0x5b   :  { %563 = vmatpush3.bf16.msra.mxu0 %v608_v21 }
  0x5c   :  { %564 = vmatprep.subr.bf16.mxu0 %v731_v0 }
  0x5f   :  { %565 = vmatpush3.bf16.msra.mxu0 %v609_v22 }
  0x60   :  { %566 = vmatprep.subr.bf16.mxu0 %v731_v0 }
  0x63   :  { %567 = vmatpush3.bf16.msra.mxu0 %v610_v23 }
  0x64   :  { %568 = vmatprep.subr.bf16.mxu0 %v731_v0 }
  0x67   :  { %569 = vmatpush3.bf16.msra.mxu0 %v611_v24 }
  0x68   :  { %570 = vmatprep.subr.bf16.mxu0 %v731_v0 }
  0x6b   :  { %571 = vmatpush3.bf16.msra.mxu0 %v612_v35 }
  0x6c   :  { %572 = vmatprep.subr.bf16.mxu0 %v731_v0 }
  0x6f   :  { %573 = vmatpush3.bf16.msra.mxu0 %v613_v36 }
  0x70   :  { %574 = vmatprep.subr.bf16.mxu0 %v731_v0 }
  0x73   :  { %575 = vmatpush3.bf16.msra.mxu0 %v614_v37 }
 0x116   :  { %v191_v26 = vpop.f32.mrf.mxu0 }
 0x117   :  { %v192_v28 = vadd.f32 %v457_v25, %v191_v26 }
 0x118   :  { %v538_v27 = vpop.f32.mrf.mxu0 }
 0x119   :  { %v198_v32 = vmax.f32 %v192_v28, 0.0 }
 0x11a   :  { %v194_v29 = vpop.f32.mrf.mxu0 }
 0x11b   :  { %v195_v30 = vadd.f32 %v457_v25, %v194_v29 }
 0x11c   :  { %v539_v31 = vpop.f32.mrf.mxu0 }
 0x11d   :  { %v199_v33 = vmax.f32 %v195_v30, 0.0 }
 0x11f   :  { %v200_v34 = vpack.c.bf16 %v199_v33, %v198_v32 }
 0x121   :  { %557 = vmatmul.mubr.bf16.vlgmr.msra.gmra.mxu1 %v200_v34 }
 0x1e1   :  { %v306_v39 = vpop.f32.mrf.mxu1 }
 0x1e2   :  { %v307_v41 = vadd.f32 %v466_v38, %v306_v39 }
 0x1e3   :  { %v558_v40 = vpop.f32.mrf.mxu1 }
 0x1e4   :  { %v313_v45 = vmax.f32 %v307_v41, 0.0 }
 0x1e5   :  { %v309_v42 = vpop.f32.mrf.mxu1 }
 0x1e6   :  { %v310_v43 = vadd.f32 %v466_v38, %v309_v42 }
 0x1e7   :  { %v559_v44 = vpop.f32.mrf.mxu1 }
 0x1e8   :  { %v314_v46 = vmax.f32 %v310_v43, 0.0 }
 0x1ea   :  { %v315_v47 = vpack.c.bf16 %v314_v46, %v313_v45 }
 0x1ec   :  { %577 = vmatmul.mubr.bf16.vlgmr.msra.gmra.mxu0 %v315_v47 }
 0x2ac   :  { %v421_v48 = vpop.f32.mrf.mxu0 }
 0x2ad   :  { %v422_v52 = vadd.f32 %v475_v49, %v421_v48 }
 0x2ae   :  { %v578_v50 = vpop.f32.mrf.mxu0 }
 0x2b0   :  { %v424_v51 = vpop.f32.mrf.mxu0 }
 0x2b1   :  { %v425_v53 = vadd.f32 %v475_v49, %v424_v51 }
 0x2b2   :  { %v579_v54 = vpop.f32.mrf.mxu0 }
 0x2b3   :  { %v491_v55 = vpack.c.bf16 %v425_v53, %v422_v52 }
 0x2b5   :  { %492 = vst [vmem:[#allocation10] sm:$0xff] %v491_v55  }
 0x2b6   :  { %706 = shalt.err (!%p703_p10)
}
 0x2b7   :  { %449 = dma.vmem_to_hbm [thread:$0]  %s444_s29, 128, %s847_s7, [#allocation4], %s724_s27, %s724_s27, %s725_s28  }
 0x2b8   :  { %721 = dma.done.wait [#allocation4], 128  }
 0x2b9   :  { %722 = vsyncadd [#allocation4], 4294967168 }
 0x2ba   :  { %453 = vsyncpa [#allocation3], 1 }
 0x2bb   :  { %454 = vsyncpa [#allocation6], 1 }
 0x2bc   :  { %455 = vsyncpa [#allocation9], 1 }
 0x2bd   :  { %456 = vsyncpa [#allocation4], 1 }

</bundles_post_ra>
